<compile_context>
chip_gen: v5e
topology: v5e:2x2
jax: 0.10.0
libtpu: 0.0.40
codegen_flags: <defaults>
</compile_context>

<pallas_src>
import functools

import jax
import jax.numpy as jnp
from jax.experimental import pallas as pl
from jax.experimental.pallas import tpu as pltpu


def _round_up(x, m):
    return (x + m - 1) // m * m


def _tpu_info():
    """(device_kind_lower, num_tensorcores, vmem_capacity_bytes) with safe fallbacks."""
    try:
        kind = jax.devices()[0].device_kind.lower()
    except Exception:
        kind = ""
    if "v7" in kind:
        cores, vmem = 2, 64 * 1024 * 1024
    elif "v6" in kind or "v5" in kind:
        cores, vmem = 1, 128 * 1024 * 1024
    else:
        cores, vmem = 1, 64 * 1024 * 1024          # conservative default
    try:
        vmem = int(pltpu.get_tpu_info().vmem_capacity_bytes)
    except Exception:
        pass
    return kind, cores, vmem


# ---------------------------------------------------------------------------
# Kernels
# ---------------------------------------------------------------------------
def _fused_kernel(x_ref, w_ref, b_ref, o_ref, *, compute_dtype):
    # x: (tm, D) f32, w: (D, Vp) bf16, b: (1, Vp) f32, o: (tm, Vp) f32
    x = x_ref[...].astype(compute_dtype)                 # in-kernel cast
    logits = jnp.dot(x, w_ref[...], preferred_element_type=jnp.float32)
    logits = logits + b_ref[...]
    m = jnp.max(logits, axis=-1, keepdims=True)
    shifted = logits - m
    lse = jnp.log(jnp.sum(jnp.exp(shifted), axis=-1, keepdims=True))
    o_ref[...] = (shifted - lse).astype(o_ref.dtype)


def _lse_kernel(x_ref, w_ref, b_ref, lse_ref, m_sc, l_sc, *, compute_dtype):
    # Recompute variant, pass 1: online logsumexp only (no logits stored).
    j = pl.program_id(1)

    @pl.when(j == 0)
    def _():
        m_sc[...] = jnp.full(m_sc.shape, -jnp.inf, m_sc.dtype)
        l_sc[...] = jnp.zeros(l_sc.shape, l_sc.dtype)

    x = x_ref[...].astype(compute_dtype)
    logits = jnp.dot(x, w_ref[...], preferred_element_type=jnp.float32)
    logits = logits + b_ref[...]

    m_prev = m_sc[...]
    m_new = jnp.maximum(m_prev, jnp.max(logits, axis=-1, keepdims=True))
    l_sc[...] = l_sc[...] * jnp.exp(m_prev - m_new) + jnp.sum(
        jnp.exp(logits - m_new), axis=-1, keepdims=True)
    m_sc[...] = m_new

    @pl.when(j == pl.num_programs(1) - 1)
    def _():
        lse_ref[...] = m_sc[...] + jnp.log(l_sc[...])


def _recompute_normalize_kernel(x_ref, w_ref, b_ref, lse_ref, o_ref, *, compute_dtype):
    # Recompute variant, pass 2: redo the matmul tile and write logits - lse.
    x = x_ref[...].astype(compute_dtype)
    logits = jnp.dot(x, w_ref[...], preferred_element_type=jnp.float32)
    logits = logits + b_ref[...]
    o_ref[...] = (logits - lse_ref[...]).astype(o_ref.dtype)


def _logits_lse_kernel(x_ref, w_ref, b_ref, logits_ref, lse_ref, m_sc, l_sc, *,
                       compute_dtype):
    # bf16-intermediate variant, pass 1: store bf16 logits + online logsumexp.
    j = pl.program_id(1)

    @pl.when(j == 0)
    def _():
        m_sc[...] = jnp.full(m_sc.shape, -jnp.inf, m_sc.dtype)
        l_sc[...] = jnp.zeros(l_sc.shape, l_sc.dtype)

    x = x_ref[...].astype(compute_dtype)
    logits = jnp.dot(x, w_ref[...], preferred_element_type=jnp.float32)
    logits = logits + b_ref[...]
    logits_ref[...] = logits.astype(logits_ref.dtype)

    m_prev = m_sc[...]
    m_new = jnp.maximum(m_prev, jnp.max(logits, axis=-1, keepdims=True))
    l_sc[...] = l_sc[...] * jnp.exp(m_prev - m_new) + jnp.sum(
        jnp.exp(logits - m_new), axis=-1, keepdims=True)
    m_sc[...] = m_new

    @pl.when(j == pl.num_programs(1) - 1)
    def _():
        lse_ref[...] = m_sc[...] + jnp.log(l_sc[...])


def _normalize_kernel(logits_ref, lse_ref, o_ref):
    # bf16-intermediate variant, pass 2: elementwise log_softmax = logits - lse.
    o_ref[...] = logits_ref[...].astype(jnp.float32) - lse_ref[...]


# ---------------------------------------------------------------------------
# Parameter preparation (done once, not per forward call)
# ---------------------------------------------------------------------------
def prepare_generator_params(weight, bias, *, compute_dtype=jnp.bfloat16, tv_max=None):
    """weight: (vocab, d_model) in PyTorch nn.Linear layout, bias: (vocab,)."""
    V, D = weight.shape
    _, _, vmem_cap = _tpu_info()
    vmem_budget = int(0.7 * vmem_cap)
    itemsize = jnp.dtype(compute_dtype).itemsize

    if tv_max is None:
        # Let the double-buffered (D, tv) weight block take ~35% of the budget.
        tv_max = (int(vmem_budget * 0.35) // (2 * D * itemsize)) // 128 * 128
        tv_max = max(512, min(tv_max, 8192))
    tv_max = max(128, _round_up(int(tv_max), 128))

    v_pad = _round_up(max(V, 128), 128)          # lane-dense vocab
    if v_pad <= tv_max:
        tv = v_pad                                # single-pass path (vocab resident)
    else:
        tv = tv_max                               # vocab-tiled two-pass path
        v_pad = _round_up(v_pad, tv)

    w = jnp.zeros((D, v_pad), dtype=compute_dtype)
    w = w.at[:, :V].set(weight.T.astype(compute_dtype))
    # Padded vocab columns get a very negative bias so they never affect the
    # max / sum-exp; they are cropped from the output.
    b = jnp.full((1, v_pad), -1e30, dtype=jnp.float32)
    b = b.at[0, :V].set(bias.astype(jnp.float32))
    return {"w": w, "b": b, "vocab": V, "tv": tv, "compute_dtype": compute_dtype}


# ---------------------------------------------------------------------------
# Forward
# ---------------------------------------------------------------------------
def generator_forward(x, params, *, tm=None, two_pass=None):
    """x: (B, S, d_model) f32 -> (B, S, vocab) float32 log-probabilities."""
    B, S, D = x.shape
    w, b = params["w"], params["b"]
    V, tv = params["vocab"], params["tv"]
    cdt = params["compute_dtype"]
    v_pad = w.shape[1]
    nv = v_pad // tv
    w_itemsize = jnp.dtype(cdt).itemsize

    kind, cores, vmem_cap = _tpu_info()
    vmem_budget = int(0.7 * vmem_cap)

    M = B * S

    # ---- row-tile selection: largest tm that fits the VMEM budget ----------
    w_block_bytes = D * tv * w_itemsize * (1 if nv == 1 else 2)
    per_row_bytes = 2 * D * 4 + 2 * tv * 4 + 16     # x f32 + out f32 (double buffered)
    if tm is None:
        cap = max(16, (int(vmem_budget * 0.8) - w_block_bytes) // per_row_bytes)
        cap = min(cap, 1024)
    else:
        cap = int(tm)
    tm = min(cap, _round_up(M, 8))
    if tm >= 256:
        tm = (tm // 256) * 256                      # MXU-row aligned on v6e/v7x
    elif tm >= 16:
        tm = _round_up(tm, 16)                      # sublane-pack aligned
    tm = max(tm, 8)
    # v7x has 2 TensorCores: keep the "parallel" row axis splittable (nm >= 2).
    if cores >= 2 and M >= 32:
        tm = min(tm, _round_up((M + 1) // 2, 16))

    m_pad = _round_up(M, tm)
    nm = m_pad // tm

    # x stays f32; the cast to the MXU dtype happens inside the kernels.
    x2 = x.reshape(M, D)
    if m_pad != M:
        x2 = jnp.pad(x2, ((0, m_pad - M), (0, 0)))

    out_bytes = m_pad * v_pad * 4
    x_bytes = m_pad * D * 4
    w_bytes = w.size * w_itemsize
    b_bytes = b.size * 4

    if nv == 1:
        # Small vocab: fully fused single-pass kernel, weight resident in VMEM.
        cost = pl.CostEstimate(
            flops=2 * m_pad * D * v_pad,
            transcendentals=m_pad * v_pad,
            bytes_accessed=x_bytes + w_bytes + b_bytes + out_bytes)
        out = pl.pallas_call(
            functools.partial(_fused_kernel, compute_dtype=cdt),
            out_shape=jax.ShapeDtypeStruct((m_pad, v_pad), jnp.float32),
            grid_spec=pltpu.PrefetchScalarGridSpec(
                num_scalar_prefetch=0,
                grid=(nm,),
                in_specs=[
                    pl.BlockSpec((tm, D), lambda i: (i, 0)),
                    pl.BlockSpec((D, v_pad), lambda i: (0, 0)),
                    pl.BlockSpec((1, v_pad), lambda i: (0, 0)),
                ],
                out_specs=pl.BlockSpec((tm, v_pad), lambda i: (i, 0)),
            ),
            compiler_params=pltpu.CompilerParams(
                dimension_semantics=("parallel",),
                vmem_limit_bytes=vmem_budget),
            cost_estimate=cost,
        )(x2, w, b)
    else:
        if two_pass is None:
            is_v5e = ("v5 lite" in kind) or ("v5e" in kind) or ("v5lite" in kind)
            # Recompute trades 2x matmul FLOPs for zero intermediate traffic:
            # worth it on v6e/v7x (~650 FLOP/byte), only for small D on v5e.
            two_pass = "recompute" if D <= (768 if is_v5e else 2048) else "bf16"

        cparams_reduce = pltpu.CompilerParams(
            dimension_semantics=("parallel", "arbitrary"),
            vmem_limit_bytes=vmem_budget)
        cparams_elemwise = pltpu.CompilerParams(
            dimension_semantics=("parallel", "parallel"),
            vmem_limit_bytes=vmem_budget)

        if two_pass == "recompute":
            # Pass 1: per-row logsumexp only (no logits intermediate in HBM).
            cost1 = pl.CostEstimate(
                flops=2 * m_pad * D * v_pad,
                transcendentals=m_pad * v_pad,
                bytes_accessed=x_bytes + nm * w_bytes + b_bytes + m_pad * 4)
            lse = pl.pallas_call(
                functools.partial(_lse_kernel, compute_dtype=cdt),
                out_shape=jax.ShapeDtypeStruct((m_pad, 1), jnp.float32),
                grid_spec=pltpu.PrefetchScalarGridSpec(
                    num_scalar_prefetch=0,
                    grid=(nm, nv),
                    in_specs=[
                        pl.BlockSpec((tm, D), lambda i, j: (i, 0)),
                        pl.BlockSpec((D, tv), lambda i, j: (0, j)),
                        pl.BlockSpec((1, tv), lambda i, j: (0, j)),
                    ],
                    out_specs=pl.BlockSpec((tm, 1), lambda i, j: (i, 0)),
                    scratch_shapes=[pltpu.VMEM((tm, 1), jnp.float32),
                                    pltpu.VMEM((tm, 1), jnp.float32)],
                ),
                compiler_params=cparams_reduce,
                cost_estimate=cost1,
            )(x2, w, b)

            # Pass 2: recompute the logits tile and write logits - lse directly.
            cost2 = pl.CostEstimate(
                flops=2 * m_pad * D * v_pad,
                transcendentals=0,
                bytes_accessed=x_bytes + nm * w_bytes + b_bytes + m_pad * 4 + out_bytes)
            out = pl.pallas_call(
                functools.partial(_recompute_normalize_kernel, compute_dtype=cdt),
                out_shape=jax.ShapeDtypeStruct((m_pad, v_pad), jnp.float32),
                grid_spec=pltpu.PrefetchScalarGridSpec(
                    num_scalar_prefetch=0,
                    grid=(nm, nv),
                    in_specs=[
                        pl.BlockSpec((tm, D), lambda i, j: (i, 0)),
                        pl.BlockSpec((D, tv), lambda i, j: (0, j)),
                        pl.BlockSpec((1, tv), lambda i, j: (0, j)),
                        pl.BlockSpec((tm, 1), lambda i, j: (i, 0)),
                    ],
                    out_specs=pl.BlockSpec((tm, tv), lambda i, j: (i, j)),
                ),
                compiler_params=cparams_elemwise,
                cost_estimate=cost2,
            )(x2, w, b, lse)
        else:
            # Pass 1: bf16 logits intermediate + online logsumexp.
            interm_bytes = m_pad * v_pad * 2
            cost1 = pl.CostEstimate(
                flops=2 * m_pad * D * v_pad,
                transcendentals=m_pad * v_pad,
                bytes_accessed=(x_bytes + nm * w_bytes + b_bytes
                                + interm_bytes + m_pad * 4))
            logits, lse = pl.pallas_call(
                functools.partial(_logits_lse_kernel, compute_dtype=cdt),
                out_shape=(jax.ShapeDtypeStruct((m_pad, v_pad), jnp.bfloat16),
                           jax.ShapeDtypeStruct((m_pad, 1), jnp.float32)),
                grid_spec=pltpu.PrefetchScalarGridSpec(
                    num_scalar_prefetch=0,
                    grid=(nm, nv),
                    in_specs=[
                        pl.BlockSpec((tm, D), lambda i, j: (i, 0)),
                        pl.BlockSpec((D, tv), lambda i, j: (0, j)),
                        pl.BlockSpec((1, tv), lambda i, j: (0, j)),
                    ],
                    out_specs=[
                        pl.BlockSpec((tm, tv), lambda i, j: (i, j)),
                        pl.BlockSpec((tm, 1), lambda i, j: (i, 0)),
                    ],
                    scratch_shapes=[pltpu.VMEM((tm, 1), jnp.float32),
                                    pltpu.VMEM((tm, 1), jnp.float32)],
                ),
                compiler_params=cparams_reduce,
                cost_estimate=cost1,
            )(x2, w, b)

            # Pass 2: elementwise normalize (bf16 logits -> f32 log-probs).
            cost2 = pl.CostEstimate(
                flops=m_pad * v_pad,
                transcendentals=0,
                bytes_accessed=interm_bytes + m_pad * 4 + out_bytes)
            out = pl.pallas_call(
                _normalize_kernel,
                out_shape=jax.ShapeDtypeStruct((m_pad, v_pad), jnp.float32),
                grid_spec=pltpu.PrefetchScalarGridSpec(
                    num_scalar_prefetch=0,
                    grid=(nm, nv),
                    in_specs=[
                        pl.BlockSpec((tm, tv), lambda i, j: (i, j)),
                        pl.BlockSpec((tm, 1), lambda i, j: (i, 0)),
                    ],
                    out_specs=pl.BlockSpec((tm, tv), lambda i, j: (i, j)),
                ),
                compiler_params=cparams_elemwise,
                cost_estimate=cost2,
            )(logits, lse)

    if (m_pad, v_pad) != (M, V):
        out = out[:M, :V]
    return out.reshape(B, S, V)


# ---------------------------------------------------------------------------
# Self-test
# ---------------------------------------------------------------------------
if __name__ == "__main__":
    key = jax.random.PRNGKey(0)
    kx, kw, kb, k2x, k2w, k2b = jax.random.split(key, 6)

    # --- Small case matching the Rydberg Generator (vocab_size = 2) ---------
    B, S, D, V = 2, 8, 32, 2
    x = jax.random.normal(kx, (B, S, D), dtype=jnp.float32)
    bound = 1.0 / (D ** 0.5)
    weight = jax.random.uniform(kw, (V, D), minval=-bound, maxval=bound, dtype=jnp.float32)
    bias = jax.random.uniform(kb, (V,), minval=-bound, maxval=bound, dtype=jnp.float32)

    params = prepare_generator_params(weight, bias)
    out = jax.block_until_ready(generator_forward(x, params))

    ref = jax.nn.log_softmax(x @ weight.T + bias + 1e-10, axis=-1)
    assert out.shape == (B, S, V)
    assert bool(jnp.all(jnp.isfinite(out)))
    # bf16 matmul inputs (f32 accumulate) -> loose tolerance vs pure-f32 reference
    assert jnp.allclose(out, ref, atol=3e-2, rtol=3e-2), "small-vocab mismatch"

    # --- Larger case exercising row padding + the vocab-tiled two-pass paths -
    B2, S2, D2, V2 = 2, 33, 128, 600     # M=66 (row pad), vocab tiled with tv=256
    x2 = jax.random.normal(k2x, (B2, S2, D2), dtype=jnp.float32)
    bound2 = 1.0 / (D2 ** 0.5)
    w2 = jax.random.uniform(k2w, (V2, D2), minval=-bound2, maxval=bound2, dtype=jnp.float32)
    b2 = jax.random.uniform(k2b, (V2,), minval=-bound2, maxval=bound2, dtype=jnp.float32)

    params2 = prepare_generator_params(w2, b2, tv_max=256)
    ref2 = jax.nn.log_softmax(x2 @ w2.T + b2 + 1e-10, axis=-1)

    out2a = jax.block_until_ready(generator_forward(x2, params2, two_pass="recompute"))
    assert out2a.shape == (B2, S2, V2)
    assert jnp.allclose(out2a, ref2, atol=3e-2, rtol=3e-2), "recompute-path mismatch"

    out2b = jax.block_until_ready(generator_forward(x2, params2, two_pass="bf16"))
    assert out2b.shape == (B2, S2, V2)
    assert jnp.allclose(out2b, ref2, atol=3e-2, rtol=3e-2), "bf16-intermediate mismatch"

    print("KERNEL_OK")
</pallas_src>

<mosaic_0001>
module attributes {stable_mosaic.version = 11 : i64} {
  func.func @_fused_kernel(%arg0: i32, %arg1: memref<16x32xf32, #tpu.memory_space<vmem>>, %arg2: memref<32x128xbf16, #tpu.memory_space<vmem>>, %arg3: memref<1x128xf32, #tpu.memory_space<vmem>>, %arg4: memref<16x128xf32, #tpu.memory_space<vmem>>) attributes {dimension_semantics = [#tpu.dimension_semantics<parallel>], iteration_bounds = array<i64: 1>, scalar_prefetch = 0 : i64, scratch_operands = 0 : i64, tpu.core_type = #tpu.core_type<tc>, window_params = [{transform_indices = @transform_0, window_bounds = array<i64: 16, 32>}, {pipeline_mode = #tpu.pipeline_mode<synchronous>, transform_indices = @transform_1, window_bounds = array<i64: 32, 128>}, {pipeline_mode = #tpu.pipeline_mode<synchronous>, transform_indices = @transform_2, window_bounds = array<i64: 1, 128>}, {transform_indices = @transform_3, window_bounds = array<i64: 16, 128>}]} {
    %c0 = arith.constant 0 : index
    %c0_0 = arith.constant 0 : index
    %0 = vector.load %arg1[%c0, %c0_0] : memref<16x32xf32, #tpu.memory_space<vmem>>, vector<16x32xf32>
    %1 = arith.truncf %0 : vector<16x32xf32> to vector<16x32xbf16>
    %c0_1 = arith.constant 0 : index
    %c0_2 = arith.constant 0 : index
    %2 = vector.load %arg2[%c0_1, %c0_2] : memref<32x128xbf16, #tpu.memory_space<vmem>>, vector<32x128xbf16>
    %cst = arith.constant dense<0.000000e+00> : vector<16x128xf32>
    %3 = tpu.matmul %1, %2, %cst {dimension_numbers = #tpu.dot_dimension_numbers<[1], [0], [0], [1], [0, 0, 1, 1], [], []>} : vector<16x32xbf16>, vector<32x128xbf16>, vector<16x128xf32> -> vector<16x128xf32>
    %c0_3 = arith.constant 0 : index
    %c0_4 = arith.constant 0 : index
    %4 = vector.load %arg3[%c0_3, %c0_4] : memref<1x128xf32, #tpu.memory_space<vmem>>, vector<1x128xf32>
    %5 = vector.broadcast %4 : vector<1x128xf32> to vector<16x128xf32>
    %6 = arith.addf %3, %5 : vector<16x128xf32>
    %cst_5 = arith.constant dense<0xFF800000> : vector<16xf32>
    %7 = vector.multi_reduction <maximumf>, %6, %cst_5 [1] : vector<16x128xf32> to vector<16xf32>
    %8 = vector.shape_cast %7 : vector<16xf32> to vector<16x1xf32>
    %9 = vector.broadcast %8 : vector<16x1xf32> to vector<16x128xf32>
    %10 = arith.subf %6, %9 : vector<16x128xf32>
    %11 = math.exp %10 : vector<16x128xf32>
    %cst_6 = arith.constant dense<0.000000e+00> : vector<16xf32>
    %12 = vector.multi_reduction <add>, %11, %cst_6 [1] : vector<16x128xf32> to vector<16xf32>
    %13 = vector.shape_cast %12 : vector<16xf32> to vector<16x1xf32>
    %14 = math.log %13 : vector<16x1xf32>
    %15 = vector.broadcast %14 : vector<16x1xf32> to vector<16x128xf32>
    %16 = arith.subf %10, %15 : vector<16x128xf32>
    %c0_7 = arith.constant 0 : index
    %c0_8 = arith.constant 0 : index
    %17 = vector.load %arg4[%c0_7, %c0_8] : memref<16x128xf32, #tpu.memory_space<vmem>>, vector<16x128xf32>
    tpu.vector_store %arg4[%c0_7, %c0_8], %16 {strides = array<i32>} : memref<16x128xf32, #tpu.memory_space<vmem>>, vector<16x128xf32>,
    return
  }
  func.func @transform_0(%arg0: i32) -> (i32, i32) {
    %c0_i32 = arith.constant 0 : i32
    %c0_i32_0 = arith.constant 0 : i32
    return %arg0, %c0_i32 : i32, i32
  }
  func.func @transform_1(%arg0: i32) -> (i32, i32) {
    %c0_i32 = arith.constant 0 : i32
    %c0_i32_0 = arith.constant 0 : i32
    %c0_i32_1 = arith.constant 0 : i32
    return %c0_i32, %c0_i32_0 : i32, i32
  }
  func.func @transform_2(%arg0: i32) -> (i32, i32) {
    %c0_i32 = arith.constant 0 : i32
    %c0_i32_0 = arith.constant 0 : i32
    %c0_i32_1 = arith.constant 0 : i32
    return %c0_i32, %c0_i32_0 : i32, i32
  }
  func.func @transform_3(%arg0: i32) -> (i32, i32) {
    %c0_i32 = arith.constant 0 : i32
    %c0_i32_0 = arith.constant 0 : i32
    return %arg0, %c0_i32 : i32, i32
  }
}

</mosaic_0001>

<bundles_post_ra>
// kernel: tpu_custom_call.1
= control target key start
LH: loop header
LB: loop body
LE: loop exit
PB: predicated region body
PF: predicated region fallthrough
CT: control target
= control target key end

     0   :  { %8 = vsyncpa [#allocation3], 0  ;;  %s281_s0 = inlined_call_operand.hbm [shape: f32[16,32], index: 0, kind: input, shape index: {}]   ;;  %s282_s1 = inlined_call_operand.hbm [shape: bf16[32,128], index: 1, kind: input, shape index: {}]   ;;  %s283_s2 = inlined_call_operand.vmem [shape: f32[1,128], index: 2, kind: input, shape index: {}]   ;;  %s284_s3 = inlined_call_operand.hbm [shape: f32[16,128], index: 3, kind: output, shape index: {}]  }
   0x1   :  { %9 = vsyncpa [#allocation6], 0 }
   0x2   :  { %10 = vsyncpa [#allocation4], 0  ;;  %s15_s14 = sshll.u32 %s281_s0, 4  ;;  %s236_s15 = smov [#allocation2]   ;;  %s16_s14 = int_to_ptr.hbm [resolvable:$true] %s15_s14 }
   0x3   :  { %s17_s16 = sshll.u32 %s236_s15, 4  ;;  %s28_s19 = sshll.u32 %s282_s1, 4  ;;  %s18_s16 = int_to_ptr.vmem [resolvable:$true] %s17_s16  ;;  %s29_s19 = int_to_ptr.hbm [resolvable:$true] %s28_s19 }
   0x4   :  { %s237_s20 = smov 128   ;;  %s238_s21 = smov 8  }
   0x5   :  { %23 = dma.hbm_to_vmem [thread:$0]  %s16_s14, 256, %s18_s16, [#allocation3], %s237_s20, %s237_s20, %s238_s21  }
   0x6   :  { %s239_s22 = smov [#allocation5]   ;;  %s240_s24 = smov 64  }
   0x7   :  { %s30_s23 = sshll.u32 %s239_s22, 4  ;;  %s241_s0 = smov 4   ;;  %s31_s23 = int_to_ptr.vmem [resolvable:$true] %s30_s23 }
   0x8   :  { %36 = dma.hbm_to_vmem [thread:$0]  %s29_s19, 256, %s31_s23, [#allocation6], %s240_s24, %s240_s24, %s241_s0  }
   0x9   :  { %230 = dma.done.wait [#allocation3], 256  }
   0xa   :  { %231 = vsyncadd [#allocation3], 4294967040 }
   0xb   :  { %232 = dma.done.wait [#allocation6], 256  }
   0xc   :  { %233 = vsyncadd [#allocation6], 4294967040  ;;  %v141_v0 = vld [vmem:[#allocation5 + $0x8] sm:$0xff]  ;;  %v140_v1 = vld [vmem:[#allocation5] sm:$0xff]  ;;  %vm71_vm0 = vcmask 261120   ;;  %s117_s29 = sshll.u32 %s284_s3, 4  ;;  %s118_s29 = int_to_ptr.hbm [resolvable:$true] %s117_s29 }
   0xd   :  { %81 = vmatpush.bf16.msra.mxu0 %v141_v0  ;;  %v48_v2 = vld [vmem:[#allocation2] sm:$0xff]  ;;  %v49_v3 = vld [vmem:[#allocation2 + $0x8] sm:$0xff] }
   0xe   :  { %v50_v4 = vpack.c.bf16 %v49_v3, %v48_v2  ;;  %v149_v5 = vld [vmem:[%s283_s2] ss:$0 sm:$0xff]  ;;  %s242_s2 = smov [#allocation7]  }
   0xf   :  { %s115_s26 = sshll.u32 %s242_s2, 4  ;;  %s116_s26 = int_to_ptr.vmem [resolvable:$true] %s115_s26 }
  0x11   :  { %82 = vmatpush.bf16.msra.mxu0 %v140_v1 }
  0x14   :  { %139 = vmatmul.msk.bf16.vlgmr.msra.gmra.mxu0 %vm71_vm0, %v50_v4 }
  0x91   :  { %v84_v6 = vpop.f32.mrf.mxu0 }
  0x92   :  { %v85_v7 = vadd.f32 %v149_v5, %v84_v6 }
  0x94   :  { %89 = vmax.xlane.f32.xlu0 %v85_v7 }
  0x99   :  { %v86_v8 = vpop.f32.mrf.mxu0 }
  0x9a   :  { %v87_v9 = vadd.f32 %v149_v5, %v86_v8 }
  0x9c   :  { %91 = vmax.xlane.f32.xlu0 %v87_v9 }
 0x107   :  { %v90_v10 = vpop.xlane.xlu0 %89 }
 0x108   :  { %v93_v11 = vsub.f32 %v85_v7, %v90_v10 }
 0x10a   :  { %v95_v12 = vmul.f32 1.442695, %v93_v11 }
 0x10c   :  { %150 = vpow2.f32 %v95_v12 }
 0x10f   :  { %v92_v13 = vpop.xlane.xlu0 %91 }
 0x110   :  { %v94_v14 = vsub.f32 %v87_v9, %v92_v13 }
 0x112   :  { %v151_v15 = vpop.eup %150  ;;  %v97_v16 = vmul.f32 1.442695, %v94_v14 }
 0x113   :  { %99 = vadd.xlane.f32.xlu1 %v151_v15 }
 0x114   :  { %152 = vpow2.f32 %v97_v16 }
 0x11a   :  { %v153_v17 = vpop.eup %152 }
 0x11b   :  { %101 = vadd.xlane.f32.xlu1 %v153_v17 }
 0x186   :  { %v100_v18 = vpop.xlane.xlu1 %99 }
 0x187   :  { %154 = vlog2.f32 %v100_v18 }
 0x18d   :  { %v155_v19 = vpop.eup %154 }
 0x18e   :  { %v104_v20 = vmul.f32 0.6931472, %v155_v19  ;;  %v102_v21 = vpop.xlane.xlu1 %101 }
 0x18f   :  { %156 = vlog2.f32 %v102_v21 }
 0x190   :  { %v107_v22 = vsub.f32 %v93_v11, %v104_v20 }
 0x192   :  { %109 = vst [vmem:[#allocation7] sm:$0xff] %v107_v22 }
 0x195   :  { %v157_v23 = vpop.eup %156 }
 0x196   :  { %v106_v24 = vmul.f32 0.6931472, %v157_v23 }
 0x198   :  { %v108_v25 = vsub.f32 %v94_v14, %v106_v24 }
 0x19a   :  { %110 = vst [vmem:[#allocation7 + $0x8] sm:$0xff] %v108_v25 }
 0x19b   :  { %123 = dma.vmem_to_hbm [thread:$0]  %s116_s26, 256, %s118_s29, [#allocation4], %s237_s20, %s237_s20, %s238_s21  }
 0x19c   :  { %234 = dma.done.wait [#allocation4], 256  }
 0x19d   :  { %235 = vsyncadd [#allocation4], 4294967040 }
 0x19e   :  { %128 = vsyncpa [#allocation3], 1 }
 0x19f   :  { %129 = vsyncpa [#allocation6], 1 }
 0x1a0   :  { %130 = vsyncpa [#allocation4], 1 }

</bundles_post_ra>
